<compile_context>
chip_gen: v7x
topology: tpu7x:2x2x1
jax: 0.10.0
libtpu: 0.0.40
codegen_flags: <defaults>
</compile_context>

<pallas_src>
import jax
import jax.numpy as jnp
from jax.experimental import pallas as pl
from jax.experimental.pallas import tpu as pltpu


def _round_up(x: int, m: int) -> int:
    return ((x + m - 1) // m) * m


# ---------------------------------------------------------------------------
# Kernel 1: exact module layout. out block (BN, C): nodes on sublanes.
# ---------------------------------------------------------------------------
def _one_hot_rows_kernel(types_ref, out_ref):
    # types_ref: (BN, 1) int32 ; out_ref: (BN, C) out_dtype
    t = types_ref[...]                                                # (BN, 1)
    classes = jax.lax.broadcasted_iota(jnp.int32, out_ref.shape, 1)   # (BN, C)
    out_ref[...] = (t == classes).astype(out_ref.dtype)


# ---------------------------------------------------------------------------
# Kernel 2: lane-dense transposed layout. out block (C, BL): nodes on lanes.
# ---------------------------------------------------------------------------
def _one_hot_lanes_kernel(types_ref, out_ref):
    # types_ref: (1, BL) int32 ; out_ref: (C, BL) out_dtype
    t = types_ref[...]                                                # (1, BL)
    classes = jax.lax.broadcasted_iota(jnp.int32, out_ref.shape, 0)   # (C, BL)
    out_ref[...] = (t == classes).astype(out_ref.dtype)


def _row_tile(n: int, block_n: int, min_grid_steps: int) -> int:
    """Row tile: multiple of 32 (legal for f32/bf16/int8 outputs), capped so
    the 1-D parallel grid keeps >= min_grid_steps steps (v7x megacore)."""
    cap = _round_up(pl.cdiv(n, max(1, min_grid_steps)), 32)
    bn = min(block_n, cap)
    return max(32, _round_up(bn, 32))


def _lane_tile(n: int, block_lanes: int, min_grid_steps: int) -> int:
    """Lane tile: multiple of 128, capped for >= min_grid_steps grid steps."""
    cap = _round_up(pl.cdiv(n, max(1, min_grid_steps)), 128)
    bl = min(block_lanes, cap)
    return max(128, _round_up(bl, 128))


def one_hot_atom_encoding(node_types: jax.Array,
                          num_types: int,
                          out_dtype=jnp.float32,
                          set_features: bool = True,
                          block_n: int = 4096,
                          min_grid_steps: int = 4):
    """Pallas implementation of OneHotAtomEncoding.forward.

    node_types: int array of shape (N,) or (N, 1).
    Returns {'node_attrs': (N, num_types), ['node_features': same array]}
    in dtype `out_dtype` (the positions dtype), matching the PyTorch module.
    """
    if node_types.ndim == 1:
        node_types = node_types[:, None]
    node_types = node_types.astype(jnp.int32)
    n = node_types.shape[0]

    bn = _row_tile(n, block_n, min_grid_steps)
    grid = (pl.cdiv(n, bn),)

    one_hot = pl.pallas_call(
        _one_hot_rows_kernel,
        out_shape=jax.ShapeDtypeStruct((n, num_types), out_dtype),
        grid_spec=pltpu.PrefetchScalarGridSpec(
            num_scalar_prefetch=0,
            grid=grid,
            in_specs=[pl.BlockSpec((bn, 1), lambda i: (i, 0))],
            out_specs=pl.BlockSpec((bn, num_types), lambda i: (i, 0)),
        ),
        compiler_params=pltpu.CompilerParams(
            dimension_semantics=("parallel",)),
    )(node_types)

    out = {"node_attrs": one_hot}
    if set_features:
        out["node_features"] = one_hot
    return out


def one_hot_atom_encoding_transposed(node_types: jax.Array,
                                     num_types: int,
                                     out_dtype=jnp.float32,
                                     block_lanes: int = 32768,
                                     min_grid_steps: int = 4):
    """Lane-dense variant: returns one_hot of shape (num_types, N).

    Mathematically `result.T == F.one_hot(types, num_types)`.  Prefer this
    layout when the consumer is a matmul and can fold the transpose into its
    dot_general dimension_numbers: stores are full-width (no vst.msk), the
    VMEM block is not lane-padded 25x, and HBM writeback is contiguous per
    sublane row.
    """
    node_types = node_types.reshape(-1).astype(jnp.int32)
    n = node_types.shape[0]
    types_row = node_types.reshape(1, n)

    bl = _lane_tile(n, block_lanes, min_grid_steps)
    grid = (pl.cdiv(n, bl),)

    return pl.pallas_call(
        _one_hot_lanes_kernel,
        out_shape=jax.ShapeDtypeStruct((num_types, n), out_dtype),
        grid_spec=pltpu.PrefetchScalarGridSpec(
            num_scalar_prefetch=0,
            grid=grid,
            in_specs=[pl.BlockSpec((1, bl), lambda i: (0, i))],
            out_specs=pl.BlockSpec((num_types, bl), lambda i: (0, i)),
        ),
        compiler_params=pltpu.CompilerParams(
            dimension_semantics=("parallel",)),
    )(types_row)


if __name__ == "__main__":
    key = jax.random.PRNGKey(0)
    num_types = 5
    n_nodes = 300  # NOT a multiple of any tile -> exercises masked partial blocks

    k1, k2 = jax.random.split(key)
    # node_types with trailing singleton dim, like the PyTorch module expects
    node_types = jax.random.randint(k1, (n_nodes, 1), 0, num_types, dtype=jnp.int32)
    # positions only matter for their dtype in the reference module
    positions = jax.random.normal(k2, (n_nodes, 3), dtype=jnp.float32)

    # Exact-semantics path: with defaults the clamp gives bn=96 -> 4 grid steps.
    data = one_hot_atom_encoding(node_types, num_types,
                                 out_dtype=positions.dtype,
                                 set_features=True)
    one_hot = jax.block_until_ready(data["node_attrs"])

    ref = jax.nn.one_hot(node_types[:, 0], num_types, dtype=positions.dtype)
    assert one_hot.shape == (n_nodes, num_types)
    assert one_hot.dtype == positions.dtype
    assert jnp.array_equal(one_hot, ref)
    assert jnp.array_equal(data["node_features"], ref)

    # Lane-dense transposed path: bl=128 -> 3 grid steps, partial last block.
    one_hot_t = jax.block_until_ready(
        one_hot_atom_encoding_transposed(node_types, num_types,
                                         out_dtype=positions.dtype))
    assert one_hot_t.shape == (num_types, n_nodes)
    assert one_hot_t.dtype == positions.dtype
    assert jnp.array_equal(one_hot_t.T, ref)

    print("KERNEL_OK")
</pallas_src>

<mosaic_0001>
module attributes {stable_mosaic.version = 11 : i64} {
  func.func @_one_hot_rows_kernel(%arg0: i32, %arg1: memref<96x1xi32, #tpu.memory_space<vmem>>, %arg2: memref<96x5xf32, #tpu.memory_space<vmem>>) attributes {dimension_semantics = [#tpu.dimension_semantics<parallel>], iteration_bounds = array<i64: 4>, scalar_prefetch = 0 : i64, scratch_operands = 0 : i64, tpu.core_type = #tpu.core_type<tc>, window_params = [{transform_indices = @transform_0, window_bounds = array<i64: 96, 1>}, {transform_indices = @transform_1, window_bounds = array<i64: 96, 5>}]} {
    %c0 = arith.constant 0 : index
    %c0_0 = arith.constant 0 : index
    %0 = vector.load %arg1[%c0, %c0_0] : memref<96x1xi32, #tpu.memory_space<vmem>>, vector<96x1xi32>
    %1 = tpu.iota {dimensions = array<i32: 1>} : vector<96x5xi32>
    %2 = vector.broadcast %0 : vector<96x1xi32> to vector<96x5xi32>
    %3 = arith.cmpi eq, %2, %1 : vector<96x5xi32>
    %4 = arith.extui %3 : vector<96x5xi1> to vector<96x5xi32>
    %5 = arith.sitofp %4 : vector<96x5xi32> to vector<96x5xf32>
    %c0_1 = arith.constant 0 : index
    %c0_2 = arith.constant 0 : index
    %6 = vector.load %arg2[%c0_1, %c0_2] : memref<96x5xf32, #tpu.memory_space<vmem>>, vector<96x5xf32>
    tpu.vector_store %arg2[%c0_1, %c0_2], %5 {strides = array<i32>} : memref<96x5xf32, #tpu.memory_space<vmem>>, vector<96x5xf32>,
    return
  }
  func.func @transform_0(%arg0: i32) -> (i32, i32) {
    %c0_i32 = arith.constant 0 : i32
    %c0_i32_0 = arith.constant 0 : i32
    return %arg0, %c0_i32 : i32, i32
  }
  func.func @transform_1(%arg0: i32) -> (i32, i32) {
    %c0_i32 = arith.constant 0 : i32
    %c0_i32_0 = arith.constant 0 : i32
    return %arg0, %c0_i32 : i32, i32
  }
}

</mosaic_0001>

<bundles_post_ra>
// kernel: tpu_custom_call.1
= control target key start
LH: loop header
LB: loop body
LE: loop exit
PB: predicated region body
PF: predicated region fallthrough
CT: control target
= control target key end

     0   :  { %s726_s6 = smov 0   ;;  %s728_s7 = smov 0   ;;  %s849_s0 = inlined_call_operand.vmem [shape: s32[300,1], index: 0, kind: input, shape index: {}]   ;;  %s850_s1 = inlined_call_operand.vmem [shape: f32[300,5], index: 1, kind: output, shape index: {}]  }
   0x1   :  { %s730_s8 = smov 0  }
   0x2 LB: > { %s739_s9 = sadd.s32 4294967295, %s680_s8   ;;  %s741_s10 = sadd.s32 1, %s680_s8   ;;  %s680_s8 = sphi %s730_s8, %s857_s8   ;;  %s676_s7 = sphi %s728_s7, %s856_s7   ;;  %s672_s6 = sphi %s726_s6, %s855_s6  }
   0x3   : > { %s41_s11 = ssub.s32 %s680_s8, %s741_s10  ;;  %s44_s12 = sadd.s32 1, %s676_s7 }
   0x4   : > { %p42_p0 = scmp.eq.s32.totalorder %s41_s11, 0  ;;  %p54_p1 = scmp.ne.s32.totalorder %s676_s7, %s672_s6 }
   0x5   : > { %p55_p2 = scmp.eq.s32.totalorder %s739_s9, 3  ;;  %p501_p3 = scmp.ge.s32.totalorder %s680_s8, 1 }
   0x6   : > { %s749_s13 = scalar_select %p42_p0, %s676_s7, %s44_s12  }
   0x7   : > { %p751_p4 = por %p55_p2, %p54_p1  ;;  %p96_p5 = scmp.lt.s32.totalorder %s680_s8, 5 }
   0x9   : > { %p97_p6 = pnand %p501_p3, %p96_p5 }
   0xa   : > { %s756_s15 = smul.u32 (!%p97_p6), 12, %s739_s9  ;;  %v714_v0 = vmov (!%p97_p6), 0   ;;  %v150_v13 = vlaneseq (!%p97_p6)  ;;  %s116_s21 = sand.u32 (!%p97_p6), 1, %s672_s6   ;;  %vm224_vm0 = vcmask (!%p97_p6), 39936   ;;  %v715_v17 = vmov (!%p97_p6), 0.0  }
   0xb   : > { %100 = sbr.rel (%p97_p6) target bundleno = 235 (0xeb), region = 24  ;;  %621 = vset.pattern.permute.xlu1 (!%p97_p6), %v714_v0  ;;  %620 = vset.pattern.permute.xlu0 (!%p97_p6), %v714_v0 }
   0xc   : > { %p124_p7 = scmp.lt.s32.totalorder (!%p97_p6), %s756_s15, 37  ;;  %s528_s22 = smul.u32 (!%p97_p6), 96, %s116_s21  ;;  %v151_v14 = vand.u32 (!%p97_p6), 127, %v150_v13 }
   0xe   : > { %s764_s23 = scalar_lea.vmem (!%p97_p6), [#allocation2], %s528_s22  }
  0x12   : > { %s125_s16 = scalar_select %p124_p7, %s756_s15, 37 }
  0x13   : > { %s245_s24 = ssub.s32 (%p751_p4), 38, %s756_s15  ;;  %s527_s25 = smul.u32 (%p751_p4), 96, %s739_s9 }
  0x14   : > { %s502_s17 = sshll.u32 %s125_s16, 3  ;;  %p246_p8 = scmp.lt.s32.totalorder (%p751_p4), %s245_s24, 12 }
  0x15   : > { %s127_s20 = scalar_lea.vmem %s849_s0, %s502_s17  ;;  %s797_s28 = scalar_lea.vmem (%p751_p4), %s850_s1, %s527_s25  }
  0x16   : > { %v140_v1 = vld [vmem:[%s127_s20 + $0x10] sm:$0xff]  ;;  %v138_v2 = vld [vmem:[%s127_s20] sm:$0xff]  ;;  %v141_v3 = vld [vmem:[%s127_s20 + $0x18] sm:$0xff] }
  0x17   : > { %159 = vperm.xlu1 %621, %v140_v1   ;;  %153 = vperm.xlu0 %620, %v138_v2   ;;  %v139_v4 = vld [vmem:[%s127_s20 + $0x8] sm:$0xff]  ;;  %v142_v6 = vld [vmem:[%s127_s20 + $0x20] sm:$0xff]  ;;  %v145_v7 = vld [vmem:[%s127_s20 + $0x38] sm:$0xff] }
  0x18   : > { %v143_v5 = vld [vmem:[%s127_s20 + $0x28] sm:$0xff]  ;;  %v144_v8 = vld [vmem:[%s127_s20 + $0x30] sm:$0xff]  ;;  %v146_v10 = vld [vmem:[%s127_s20 + $0x40] sm:$0xff] }
  0x19   : > { %v147_v9 = vld [vmem:[%s127_s20 + $0x48] sm:$0xff]  ;;  %v149_v11 = vld [vmem:[%s127_s20 + $0x58] sm:$0xff]  ;;  %v148_v12 = vld [vmem:[%s127_s20 + $0x50] sm:$0xff] }
  0x1b   : > { %162 = vperm.xlu1 %621, %v141_v3   ;;  %156 = vperm.xlu0 %620, %v139_v4  }
  0x1f   : > { %168 = vperm.xlu1 %621, %v143_v5   ;;  %165 = vperm.xlu0 %620, %v142_v6  }
  0x23   : > { %174 = vperm.xlu1 %621, %v145_v7   ;;  %171 = vperm.xlu0 %620, %v144_v8  }
  0x27   : > { %180 = vperm.xlu1 %621, %v147_v9   ;;  %177 = vperm.xlu0 %620, %v146_v10  }
  0x2b   : > { %186 = vperm.xlu1 %621, %v149_v11   ;;  %183 = vperm.xlu0 %620, %v148_v12  }
  0x96   : > { %v160_v15 = vpop.permute.xlu1 %159  ;;  %v154_v16 = vpop.permute.xlu0 %153 }
  0x97   : > { %vm190_vm1 = vcmp.eq.s32.totalorder %v160_v15, %v151_v14  ;;  %vm188_vm2 = vcmp.eq.s32.totalorder %v154_v16, %v151_v14 }
  0x98   : > { %v505_v18 = vsel %vm190_vm1, 1.0, %v715_v17  ;;  %v503_v19 = vsel %vm188_vm2, 1.0, %v715_v17 }
  0x99   : > { %227 = vst.msk [vmem:[%s764_s23 + $0x10] sm:$0xff] %vm224_vm0, %v505_v18  ;;  %225 = vst.msk [vmem:[%s764_s23] sm:$0xff] %vm224_vm0, %v503_v19 }
  0x9a   : > { %v163_v20 = vpop.permute.xlu1 %162  ;;  %v157_v21 = vpop.permute.xlu0 %156 }
  0x9b   : > { %vm191_vm3 = vcmp.eq.s32.totalorder %v163_v20, %v151_v14  ;;  %vm189_vm4 = vcmp.eq.s32.totalorder %v157_v21, %v151_v14 }
  0x9c   : > { %v506_v22 = vsel %vm191_vm3, 1.0, %v715_v17  ;;  %v504_v23 = vsel %vm189_vm4, 1.0, %v715_v17 }
  0x9d   : > { %228 = vst.msk [vmem:[%s764_s23 + $0x18] sm:$0xff] %vm224_vm0, %v506_v22  ;;  %226 = vst.msk [vmem:[%s764_s23 + $0x8] sm:$0xff] %vm224_vm0, %v504_v23 }
  0x9e   : > { %v169_v24 = vpop.permute.xlu1 %168  ;;  %v166_v25 = vpop.permute.xlu0 %165 }
  0x9f   : > { %vm193_vm5 = vcmp.eq.s32.totalorder %v169_v24, %v151_v14  ;;  %vm192_vm6 = vcmp.eq.s32.totalorder %v166_v25, %v151_v14 }
  0xa0   : > { %v508_v26 = vsel %vm193_vm5, 1.0, %v715_v17  ;;  %v507_v27 = vsel %vm192_vm6, 1.0, %v715_v17 }
  0xa1   : > { %230 = vst.msk [vmem:[%s764_s23 + $0x28] sm:$0xff] %vm224_vm0, %v508_v26  ;;  %229 = vst.msk [vmem:[%s764_s23 + $0x20] sm:$0xff] %vm224_vm0, %v507_v27 }
  0xa2   : > { %v175_v28 = vpop.permute.xlu1 %174  ;;  %v172_v29 = vpop.permute.xlu0 %171 }
  0xa3   : > { %vm195_vm7 = vcmp.eq.s32.totalorder %v175_v28, %v151_v14  ;;  %vm194_vm8 = vcmp.eq.s32.totalorder %v172_v29, %v151_v14 }
  0xa4   : > { %v510_v30 = vsel %vm195_vm7, 1.0, %v715_v17  ;;  %v509_v31 = vsel %vm194_vm8, 1.0, %v715_v17 }
  0xa5   : > { %232 = vst.msk [vmem:[%s764_s23 + $0x38] sm:$0xff] %vm224_vm0, %v510_v30  ;;  %231 = vst.msk [vmem:[%s764_s23 + $0x30] sm:$0xff] %vm224_vm0, %v509_v31 }
  0xa6   : > { %v181_v32 = vpop.permute.xlu1 %180  ;;  %v178_v33 = vpop.permute.xlu0 %177 }
  0xa7   : > { %vm197_vm9 = vcmp.eq.s32.totalorder %v181_v32, %v151_v14  ;;  %vm196_vm10 = vcmp.eq.s32.totalorder %v178_v33, %v151_v14  ;;  %243 = sbr.rel (!%p751_p4) target bundleno = 235 (0xeb), region = 28 }
  0xa8   : > { %v512_v34 = vsel %vm197_vm9, 1.0, %v715_v17  ;;  %v511_v35 = vsel %vm196_vm10, 1.0, %v715_v17 }
  0xa9   : > { %234 = vst.msk [vmem:[%s764_s23 + $0x48] sm:$0xff] %vm224_vm0, %v512_v34  ;;  %233 = vst.msk [vmem:[%s764_s23 + $0x40] sm:$0xff] %vm224_vm0, %v511_v35 }
  0xaa   : > { %v187_v36 = vpop.permute.xlu1 %186  ;;  %v184_v37 = vpop.permute.xlu0 %183 }
  0xab   : > { %vm199_vm11 = vcmp.eq.s32.totalorder %v187_v36, %v151_v14  ;;  %vm198_vm12 = vcmp.eq.s32.totalorder %v184_v37, %v151_v14 }
  0xac   : > { %v514_v38 = vsel %vm199_vm11, 1.0, %v715_v17  ;;  %v513_v39 = vsel %vm198_vm12, 1.0, %v715_v17 }
  0xad   : > { %236 = vst.msk [vmem:[%s764_s23 + $0x58] sm:$0xff] %vm224_vm0, %v514_v38  ;;  %235 = vst.msk [vmem:[%s764_s23 + $0x50] sm:$0xff] %vm224_vm0, %v513_v39 }
  0xae   : > { %s859_s24 = smov (!%p246_p8, %s245_s24), 12 }
  0xaf   : > { %s515_s29 = sshll.u32 %s859_s24, 7 }
  0xb0   : > { %p518_p9 = scmp.eq.s32.totalorder %s515_s29, 0 }
  0xb1   : > { %622 = sdivrem.u32 (!%p518_p9), %s859_s24, 12 }
  0xb2   : > { %254 = sbr.rel (%p518_p9) target bundleno = 235 (0xeb), region = 32 }
  0xba   : > { %s803_s30 = spop.drf %622 }
  0xbb   : > { %p519_p10 = scmp.le.s32.totalorder %s803_s30, 0 }
  0xbc   : > { %s852_s2 = smov (!%p519_p10), %s797_s28  ;;  %s853_s3 = smov (!%p519_p10), %s764_s23 }
  0xbd   : > { %454 = sbr.rel (%p519_p10) target bundleno = 206 (0xce), region = 108  ;;  %s812_s4 = smov (!%p519_p10), 0  }
  0xbe   : > { %s814_s5 = smov (!%p519_p10), 0  }
  0xc4 LB: >> { %v340_v40 = vld [vmem:[%s688_s3] sm:$0xff]  ;;  %v342_v41 = vld [vmem:[%s688_s3 + $0x8] sm:$0xff]  ;;  %v344_v42 = vld [vmem:[%s688_s3 + $0x10] sm:$0xff]  ;;  %s364_s6 = sadd.s32 1, %s692_s4  ;;  %s334_s5 = sadd.s32 1, %s696_s5   ;;  %s696_s5 = sphi %s814_s5, %s334_s5   ;;  %s692_s4 = sphi %s812_s4, %s854_s4   ;;  %s688_s3 = sphi %s853_s3, %s369_s3   ;;  %s684_s2 = sphi %s852_s2, %s370_s2  }
  0xc5   : >> { %341 = vst [vmem:[%s684_s2] sm:$0xff] %v340_v40  ;;  %343 = vst [vmem:[%s684_s2 + $0x8] sm:$0xff] %v342_v41  ;;  %v346_v43 = vld [vmem:[%s688_s3 + $0x18] sm:$0xff]  ;;  %v348_v44 = vld [vmem:[%s688_s3 + $0x20] sm:$0xff]  ;;  %p365_p11 = scmp.ge.s32.totalorder %s364_s6, %s803_s30  ;;  %p333_p12 = scmp.ge.s32.totalorder %s334_s5, %s803_s30 }
  0xc6   : >> { %345 = vst [vmem:[%s684_s2 + $0x10] sm:$0xff] %v344_v42  ;;  %v350_v45 = vld [vmem:[%s688_s3 + $0x28] sm:$0xff]  ;;  %347 = vst [vmem:[%s684_s2 + $0x18] sm:$0xff] %v346_v43  ;;  %v352_v46 = vld [vmem:[%s688_s3 + $0x30] sm:$0xff] }
  0xc7   : >> { %349 = vst [vmem:[%s684_s2 + $0x20] sm:$0xff] %v348_v44  ;;  %351 = vst [vmem:[%s684_s2 + $0x28] sm:$0xff] %v350_v45  ;;  %v354_v47 = vld [vmem:[%s688_s3 + $0x38] sm:$0xff]  ;;  %v356_v48 = vld [vmem:[%s688_s3 + $0x40] sm:$0xff]  ;;  %s861_s6 = smov (%p365_p11, %s364_s6), 0  ;;  %336 = sbr.rel (!%p333_p12) target bundleno = 196 (0xc4), region = 114 }
  0xc8   : >> { %353 = vst [vmem:[%s684_s2 + $0x30] sm:$0xff] %v352_v46  ;;  %355 = vst [vmem:[%s684_s2 + $0x38] sm:$0xff] %v354_v47  ;;  %v358_v49 = vld [vmem:[%s688_s3 + $0x48] sm:$0xff]  ;;  %v360_v50 = vld [vmem:[%s688_s3 + $0x50] sm:$0xff]  ;;  %s367_s8 = smul.u32 96, %s861_s6  ;;  %s854_s4 = smov %s861_s6 }
  0xc9   : >> { %357 = vst [vmem:[%s684_s2 + $0x40] sm:$0xff] %v356_v48  ;;  %v362_v51 = vld [vmem:[%s688_s3 + $0x58] sm:$0xff]  ;;  %359 = vst [vmem:[%s684_s2 + $0x48] sm:$0xff] %v358_v49 }
  0xca   : >> { %361 = vst [vmem:[%s684_s2 + $0x50] sm:$0xff] %v360_v50  ;;  %363 = vst [vmem:[%s684_s2 + $0x58] sm:$0xff] %v362_v51  ;;  %s369_s3 = scalar_lea.vmem %s764_s23, %s367_s8 [#allocation2]   ;;  %s370_s2 = scalar_lea.vmem %s797_s28, %s367_s8  }
  0xce PF: > { %624 = sdivrem.u32 %s859_s24, 12 }
  0xcf   : > { %s520_s9 = smul.u32 96, %s803_s30 }
  0xd1   : > { %s375_s11 = scalar_lea.vmem %s764_s23, %s520_s9 [#allocation2]   ;;  %s377_s12 = scalar_lea.vmem %s797_s28, %s520_s9  }
  0xd7   : > { %s625_s14 = spop.drf %624 }
  0xd8   : > { %p522_p13 = scmp.le.s32.totalorder %s625_s14, 0 }
  0xd9   : > { %s698_s15 = smov (!%p522_p13), %s377_s12   ;;  %s702_s16 = smov (!%p522_p13), %s375_s11  }
  0xda   : > { %468 = sbr.rel (%p522_p13) target bundleno = 235 (0xeb), region = 119  ;;  %s706_s17 = smov (!%p522_p13), 0  }
  0xdb   : > { %s710_s18 = smov (!%p522_p13), 0  }
  0xe1 LB: >> { %v387_v52 = vld [vmem:[%s704_s16] sm:$0xff]  ;;  %s389_s19 = sadd.s32 1, %s708_s17  ;;  %s381_s18 = sadd.s32 1, %s712_s18   ;;  %s712_s18 = sphi %s710_s18, %s381_s18   ;;  %s708_s17 = sphi %s706_s17, %s707_s17   ;;  %s704_s16 = sphi %s702_s16, %s394_s16   ;;  %s700_s15 = sphi %s698_s15, %s395_s15  }
  0xe2   : >> { %388 = vst [vmem:[%s700_s15] sm:$0xff] %v387_v52  ;;  %p390_p0 = scmp.ge.s32.totalorder %s389_s19, %s625_s14  ;;  %p380_p1 = scmp.ge.s32.totalorder %s381_s18, %s625_s14 }
  0xe4   : >> { %s863_s19 = smov (%p390_p0, %s389_s19), 0  ;;  %383 = sbr.rel (!%p380_p1) target bundleno = 225 (0xe1), region = 125 }
  0xe5   : >> { %s523_s20 = sshll.u32 %s863_s19, 3  ;;  %s707_s17 = smov %s863_s19  }
  0xe6   : >> { %s394_s16 = scalar_lea.vmem %s375_s11, %s523_s20 [#allocation2]   ;;  %s395_s15 = scalar_lea.vmem %s377_s12, %s523_s20  }
  0xeb PF: > { %p8_p2 = scmp.ge.s32.totalorder %s741_s10, 6   ;;  %s855_s6 = smov %s676_s7 }
  0xec   : > { %s856_s7 = smov %s749_s13  ;;  %s857_s8 = smov %s741_s10 }
  0xed   :  { %10 = sbr.rel (!%p8_p2) target bundleno = 2 (0x2), region = 136 }

</bundles_post_ra>
